<compile_context>
chip_gen: v6e
topology: v6e:2x2x1
jax: 0.10.0
libtpu: 0.0.40
codegen_flags: <defaults>
</compile_context>

<pallas_src>
import jax
import jax.numpy as jnp
from jax.experimental import pallas as pl
from jax.experimental.pallas import tpu as pltpu


# Conservative, generation-safe sizing:
#   single-buffer block budget ~8 MiB  -> ~16-24 MiB double-buffered
#   explicit scoped-VMEM limit 32 MiB  -> fits v5e/v6e (128 MiB phys) and v7x (64 MiB phys)
_VMEM_SINGLE_BUFFER_BUDGET = 8 << 20
_VMEM_LIMIT_BYTES = 32 << 20


def _group_all_kernel(xyz_ref, feat_ref, out_ref):
    # xyz_ref : (Bb, 3,   Nt)   pre-transposed xyz slab (lane-dense on N)
    # feat_ref: (Bb, C,   Nt)   feature slab, native dtype
    # out_ref : (Bb, C+3, Nt)   output slab (lane-dense on N)
    #
    # Two direct slab stores with an in-kernel VPU cast (no wrapper-side
    # promoted copy of features, no concatenate temporary). The feature slab
    # lands at sublane offset 3 of the output block; the shifted stores are
    # hidden under DMA for this HBM-bound copy.
    out_ref[:, :3, :] = xyz_ref[...].astype(out_ref.dtype)
    out_ref[:, 3:, :] = feat_ref[...].astype(out_ref.dtype)


def _round_up(x, m):
    return ((x + m - 1) // m) * m


def _choose_tiles(B, N, C, xyz_isz, feat_isz, out_isz,
                  budget=_VMEM_SINGLE_BUFFER_BUDGET):
    """Pick (Bb, Nt) so one grid step's blocks fit the single-buffer budget.

    Nt is either the full N or a multiple of 128 (lane-dense, unmasked stores).
    No divisibility requirement on B or N — grids use cdiv and Pallas masks the
    ragged trailing blocks. Ensures >= 2 grid steps when possible (v7x has two
    TensorCores sharding the "parallel" axes).
    """
    # bytes of all three blocks for a single batch element per lane column
    col_bytes = 3 * xyz_isz + C * feat_isz + (C + 3) * out_isz
    full_n_bytes = N * col_bytes

    if full_n_bytes <= budget or N <= 128:
        nt = N
        bb = max(1, min(B, budget // max(full_n_bytes, 1)))
    else:
        nt = max(128, (budget // max(col_bytes, 1)) // 128 * 128)
        nt = min(nt, _round_up(N, 128))
        bb = 1

    grid_b = -(-B // bb)
    grid_n = -(-N // nt)
    if grid_b * grid_n < 2:
        if B >= 2:
            bb = -(-B // 2)           # split batch across the two TCs
        elif N >= 256 and nt == N:
            nt = max(128, _round_up(-(-N // 2), 128))   # split N instead
    return bb, nt


def group_all(xyz, new_xyz=None, features=None, use_xyz=True):
    """Pallas implementation of GroupAll.forward.

    xyz:      (B, N, 3)
    new_xyz:  ignored (kept for signature parity)
    features: (B, C, N) or None
    returns:  (B, C+3, 1, N) if features is not None and use_xyz
              (B, C,   1, N) if features is not None and not use_xyz
              (B, 3,   1, N) if features is None
    """
    del new_xyz  # ignored, as in the PyTorch module
    B, N, _ = xyz.shape

    if features is None:
        # pure layout change; no hot-path compute -> plain JAX glue (XLA fuses)
        return jnp.transpose(xyz, (0, 2, 1))[:, :, None, :]

    if not use_xyz:
        # pure reshape; no hot-path compute -> plain JAX glue (XLA fuses)
        return features[:, :, None, :]

    C = features.shape[1]
    out_dtype = jnp.promote_types(xyz.dtype, features.dtype)

    # Cheap layout transpose of the tiny xyz tensor (B*N*3 elements) in the
    # wrapper; dtype stays native — the kernel casts on the VPU.
    xyz_t = jnp.transpose(xyz, (0, 2, 1))           # (B, 3, N)

    xyz_isz = jnp.dtype(xyz.dtype).itemsize
    feat_isz = jnp.dtype(features.dtype).itemsize
    out_isz = jnp.dtype(out_dtype).itemsize

    Bb, Nt = _choose_tiles(B, N, C, xyz_isz, feat_isz, out_isz)

    grid = (pl.cdiv(B, Bb), pl.cdiv(N, Nt))

    grid_spec = pltpu.PrefetchScalarGridSpec(
        num_scalar_prefetch=0,
        grid=grid,
        in_specs=[
            pl.BlockSpec((Bb, 3, Nt), lambda b, n: (b, 0, n)),
            pl.BlockSpec((Bb, C, Nt), lambda b, n: (b, 0, n)),
        ],
        out_specs=pl.BlockSpec((Bb, C + 3, Nt), lambda b, n: (b, 0, n)),
    )

    out = pl.pallas_call(
        _group_all_kernel,
        out_shape=jax.ShapeDtypeStruct((B, C + 3, N), out_dtype),
        grid_spec=grid_spec,
        compiler_params=pltpu.CompilerParams(
            dimension_semantics=("parallel", "parallel"),
            vmem_limit_bytes=_VMEM_LIMIT_BYTES,
        ),
    )(xyz_t, features)

    # Free reshape: add the unit "nsample" dim outside the kernel so in-kernel
    # stores stay lane-dense on the last dim.
    return out[:, :, None, :]


if __name__ == "__main__":
    key = jax.random.PRNGKey(0)
    k1, k2, k3 = jax.random.split(key, 3)

    B, N, C = 2, 16, 4
    xyz = jax.random.normal(k1, (B, N, 3), dtype=jnp.float32)
    new_xyz = jax.random.normal(k2, (B, 1, 3), dtype=jnp.float32)  # ignored
    features = jax.random.normal(k3, (B, C, N), dtype=jnp.float32)

    # --- matching dtypes ---
    out = jax.block_until_ready(group_all(xyz, new_xyz, features, use_xyz=True))
    ref = jnp.concatenate(
        [jnp.transpose(xyz, (0, 2, 1))[:, :, None, :], features[:, :, None, :]],
        axis=1,
    )
    assert out.shape == (B, C + 3, 1, N), out.shape
    assert out.dtype == jnp.promote_types(xyz.dtype, features.dtype)
    assert jnp.allclose(out, ref, atol=0, rtol=0), "mismatch vs reference"

    # --- mixed dtypes (exercises the in-kernel promotion path) ---
    features_bf16 = features.astype(jnp.bfloat16)
    out_mixed = jax.block_until_ready(
        group_all(xyz, new_xyz, features_bf16, use_xyz=True))
    ref_mixed = jnp.concatenate(
        [jnp.transpose(xyz, (0, 2, 1))[:, :, None, :].astype(jnp.float32),
         features_bf16[:, :, None, :].astype(jnp.float32)],
        axis=1,
    )
    assert out_mixed.dtype == jnp.float32
    assert jnp.allclose(out_mixed, ref_mixed, atol=0, rtol=0), "mixed-dtype mismatch"

    # --- non-kernel paths for parity ---
    out_no_xyz = jax.block_until_ready(group_all(xyz, new_xyz, features, use_xyz=False))
    assert out_no_xyz.shape == (B, C, 1, N)
    out_no_feat = jax.block_until_ready(group_all(xyz, new_xyz, None))
    assert out_no_feat.shape == (B, 3, 1, N)

    print("KERNEL_OK")
</pallas_src>

<mosaic_0001>
module attributes {stable_mosaic.version = 11 : i64} {
  func.func @_group_all_kernel(%arg0: i32, %arg1: i32, %arg2: memref<1x3x16xf32, #tpu.memory_space<vmem>>, %arg3: memref<1x4x16xf32, #tpu.memory_space<vmem>>, %arg4: memref<1x7x16xf32, #tpu.memory_space<vmem>>) attributes {dimension_semantics = [#tpu.dimension_semantics<parallel>, #tpu.dimension_semantics<parallel>], iteration_bounds = array<i64: 2, 1>, scalar_prefetch = 0 : i64, scratch_operands = 0 : i64, tpu.core_type = #tpu.core_type<tc>, window_params = [{transform_indices = @transform_0, window_bounds = array<i64: 1, 3, 16>}, {transform_indices = @transform_1, window_bounds = array<i64: 1, 4, 16>}, {transform_indices = @transform_2, window_bounds = array<i64: 1, 7, 16>}]} {
    %c0 = arith.constant 0 : index
    %c0_0 = arith.constant 0 : index
    %c0_1 = arith.constant 0 : index
    %0 = vector.load %arg2[%c0, %c0_0, %c0_1] : memref<1x3x16xf32, #tpu.memory_space<vmem>>, vector<1x3x16xf32>
    %c0_2 = arith.constant 0 : index
    %c0_3 = arith.constant 0 : index
    %c0_4 = arith.constant 0 : index
    %1 = vector.load %arg4[%c0_2, %c0_3, %c0_4] : memref<1x7x16xf32, #tpu.memory_space<vmem>>, vector<1x3x16xf32>
    tpu.vector_store %arg4[%c0_2, %c0_3, %c0_4], %0 {strides = array<i32>} : memref<1x7x16xf32, #tpu.memory_space<vmem>>, vector<1x3x16xf32>,
    %c0_5 = arith.constant 0 : index
    %c0_6 = arith.constant 0 : index
    %c0_7 = arith.constant 0 : index
    %2 = vector.load %arg3[%c0_5, %c0_6, %c0_7] : memref<1x4x16xf32, #tpu.memory_space<vmem>>, vector<1x4x16xf32>
    %c0_8 = arith.constant 0 : index
    %c3 = arith.constant 3 : index
    %c0_9 = arith.constant 0 : index
    %3 = vector.load %arg4[%c0_8, %c3, %c0_9] : memref<1x7x16xf32, #tpu.memory_space<vmem>>, vector<1x4x16xf32>
    tpu.vector_store %arg4[%c0_8, %c3, %c0_9], %2 {strides = array<i32>} : memref<1x7x16xf32, #tpu.memory_space<vmem>>, vector<1x4x16xf32>,
    return
  }
  func.func @transform_0(%arg0: i32, %arg1: i32) -> (i32, i32, i32) {
    %c0_i32 = arith.constant 0 : i32
    %c0_i32_0 = arith.constant 0 : i32
    return %arg0, %c0_i32, %arg1 : i32, i32, i32
  }
  func.func @transform_1(%arg0: i32, %arg1: i32) -> (i32, i32, i32) {
    %c0_i32 = arith.constant 0 : i32
    %c0_i32_0 = arith.constant 0 : i32
    return %arg0, %c0_i32, %arg1 : i32, i32, i32
  }
  func.func @transform_2(%arg0: i32, %arg1: i32) -> (i32, i32, i32) {
    %c0_i32 = arith.constant 0 : i32
    %c0_i32_0 = arith.constant 0 : i32
    return %arg0, %c0_i32, %arg1 : i32, i32, i32
  }
}

</mosaic_0001>

<bundles_post_ra>
// kernel: tpu_custom_call.1
= control target key start
LH: loop header
LB: loop body
LE: loop exit
PB: predicated region body
PF: predicated region fallthrough
CT: control target
= control target key end

     0   :  { %s366_s9 = smov 0   ;;  %s368_s10 = smov 0   ;;  %s390_s0 = inlined_call_operand.vmem [shape: f32[2,3,16], index: 0, kind: input, shape index: {}]   ;;  %s391_s1 = inlined_call_operand.vmem [shape: f32[2,4,16], index: 1, kind: input, shape index: {}]   ;;  %s392_s2 = inlined_call_operand.vmem [shape: f32[2,7,16], index: 2, kind: output, shape index: {}]  }
   0x1   :  { %s370_s11 = smov 0  }
   0x2 LB: > { %s24_s12 = sadd.s32 1, %s345_s10  ;;  %p297_p0 = scmp.ge.s32.totalorder %s349_s11, 1  ;;  %s349_s11 = sphi %s370_s11, %s12_s11   ;;  %s345_s10 = sphi %s368_s10, %s394_s10   ;;  %s341_s9 = sphi %s366_s9, %s393_s9  }
   0x3   : > { %p26_p1 = scmp.ge.s32.totalorder %s24_s12, 2  ;;  %p144_p2 = scmp.lt.s32.totalorder %s349_s11, 3 }
   0x5   : > { %s396_s12 = smov (%p26_p1, %s24_s12), 0  ;;  %p145_p3 = pnand %p297_p0, %p144_p2 }
   0x6   : > { %p177_p4 = scmp.lt.s32.totalorder (!%p145_p3), %s341_s9, 1 }
   0x7   : > { %148 = sbr.rel (%p145_p3) target bundleno = 18 (0x12), region = 28 }
   0xc   : > { %s398_s9 = smov (!%p177_p4, %s341_s9), 1  ;;  %vm199_vm0 = vcmask 124928   ;;  %vm202_vm1 = vcmask 125952  }
   0xd   : > { %s298_s13 = sshll.u32 %s398_s9, 2  ;;  %s300_s14 = sshll.u32 %s398_s9, 3 }
   0xe   : > { %s183_s17 = scalar_lea.vmem %s390_s0, %s298_s13  ;;  %s197_s20 = scalar_lea.vmem %s392_s2, %s300_s14 }
   0xf   : > { %v198_v0 = vld [vmem:[%s183_s17] sm:$0x7]  ;;  %s190_s23 = scalar_lea.vmem %s391_s1, %s298_s13 }
  0x10   : > { %200 = vst.msk [vmem:[%s197_s20] sm:$0x7] %vm199_vm0, %v198_v0  ;;  %v201_v1 = vld [vmem:[%s190_s23] sm:$0xf] }
  0x11   : > { %203 = vst.msk [vmem:[%s197_s20 + $0x3] sm:$0xf] %vm202_vm1, %v201_v1 }
  0x12 PF: > { %s12_s11 = sadd.s32 1, %s349_s11   ;;  %s393_s9 = smov %s345_s10 }
  0x13   : > { %p9_p5 = scmp.ge.s32.totalorder %s12_s11, 4   ;;  %s394_s10 = smov %s396_s12 }
  0x15   :  { %11 = sbr.rel (!%p9_p5) target bundleno = 2 (0x2), region = 61 }

</bundles_post_ra>
